<compile_context>
chip_gen: v6e
topology: v6e:2x2x1
jax: 0.10.0
libtpu: 0.0.40
codegen_flags: <defaults>
</compile_context>

<pallas_src>
import functools

import jax
import jax.numpy as jnp
from jax import lax
from jax.experimental import pallas as pl
from jax.experimental.pallas import tpu as pltpu


DROP_P = 0.8                        # torch.nn.Dropout(0.8)
KEEP_SCALE = 1.0 / (1.0 - DROP_P)   # inverted-dropout scaling (training mode)
_KEEP_THRESHOLD = int(DROP_P * (1 << 31))   # keep iff top-31 random bits >= this


def _i32(c):
    """uint32 constant -> int32 two's-complement literal (Mosaic-friendly)."""
    c &= 0xFFFFFFFF
    return jnp.int32(c - (1 << 32) if c >= (1 << 31) else c)


def _uniform_bits_i32(idx, seed):
    """Counter-based PRNG: int32 with uniformly-mixed bits from (idx, seed).

    splitmix32/lowbias32-style finalizer using only int32 ops (wrapping mul,
    xor, logical shifts) so it lowers both on the TPU VPU and in interpret mode.
    """
    z = idx * _i32(0x9E3779B9) + seed
    z = lax.shift_right_logical(z, 16) ^ z
    z = z * _i32(0x7FEB352D)
    z = lax.shift_right_logical(z, 15) ^ z
    z = z * _i32(0x846CA68B)
    z = lax.shift_right_logical(z, 16) ^ z
    return z


def _fused_kernel(seed_ref, x_ref, w_ref, b_ref, o_ref, *,
                  training: bool, rows_per_tile: int, row_width: int):
    """relu(fc(relu(dropout(x)))) on one lane-dense grouped tile."""
    x = x_ref[...]  # (rows_per_tile, row_width) float32

    if training:
        seed = seed_ref[0]
        row0 = pl.program_id(0) * rows_per_tile
        rows = row0 + lax.broadcasted_iota(jnp.int32, x.shape, 0)
        cols = lax.broadcasted_iota(jnp.int32, x.shape, 1)
        # Absolute flat element index -> dropout mask independent of tiling.
        idx = rows * jnp.int32(row_width) + cols
        bits = _uniform_bits_i32(idx, seed)
        r = lax.shift_right_logical(bits, 1)            # uniform in [0, 2^31)
        keep = r >= jnp.int32(_KEEP_THRESHOLD)          # P(keep) = 1 - DROP_P
        # relu(dropout(x)) fused into a single select.
        v2 = jnp.where(keep & (x > 0.0), x * KEEP_SCALE, 0.0)
    else:
        v2 = jnp.maximum(x, 0.0)                        # eval-mode dropout = id

    y = jnp.dot(v2, w_ref[...], preferred_element_type=jnp.float32)
    y = y + b_ref[...]                                  # (rows, 128) + (1, 128)
    o_ref[...] = jnp.maximum(y, 0.0).astype(o_ref.dtype)


def fused_dropout_relu_linear_relu(x, weight, bias, seed, *, training=True, tm=512):
    """x: (B, C, H, W) with W == in_features. weight: (out, in) torch layout."""
    B, C, H, W = x.shape
    K = W
    N = weight.shape[0]
    assert weight.shape == (N, K)
    assert 128 % N == 0, "lane-dense grouping assumes out_features divides 128"

    g = 128 // N                  # logical rows packed per lane-dense row (16)
    M = B * C * H

    # Row tile: multiple of g*8 (=128) so grouped blocks stay (8,128)-aligned.
    tm = max(g * 8, (tm // (g * 8)) * (g * 8))
    n_tiles = pl.cdiv(M, tm)
    M_pad = n_tiles * tm

    x2d = x.reshape(M, K).astype(jnp.float32)
    if M_pad != M:
        x2d = jnp.pad(x2d, ((0, M_pad - M), (0, 0)))    # zero rows -> sliced off later

    # Lane-dense grouped views (pure layout plumbing, row-major order preserved):
    #   Xg[p, j*K + k]  = x2d[g*p + j, k]
    #   out[p, j*N + n] = y[g*p + j, n]
    xg = x2d.reshape(M_pad // g, g * K)

    # Block-diagonal weight: wbig[j*K + k, j*N + n] = weight[n, k]; output bytes
    # are unchanged (N itself is NOT padded), only (free) MXU work grows.
    w_t = jnp.transpose(weight).astype(jnp.float32)     # (K, N)
    wbig = (jnp.eye(g, dtype=jnp.float32)[:, None, :, None]
            * w_t[None, :, None, :]).reshape(g * K, g * N)
    b_tiled = jnp.tile(bias.astype(jnp.float32), g).reshape(1, g * N)   # (1, 128)

    seed_arr = jnp.asarray([seed], dtype=jnp.int32)
    rg = tm // g                                        # grouped rows per tile

    kernel = functools.partial(_fused_kernel, training=training,
                               rows_per_tile=rg, row_width=g * K)

    out = pl.pallas_call(
        kernel,
        out_shape=jax.ShapeDtypeStruct((M_pad // g, g * N), jnp.float32),
        grid_spec=pltpu.PrefetchScalarGridSpec(
            num_scalar_prefetch=1,
            grid=(n_tiles,),
            in_specs=[
                pl.BlockSpec((rg, g * K), lambda i, seed_ref: (i, 0)),
                pl.BlockSpec((g * K, g * N), lambda i, seed_ref: (0, 0)),
                pl.BlockSpec((1, g * N), lambda i, seed_ref: (0, 0)),
            ],
            out_specs=pl.BlockSpec((rg, g * N), lambda i, seed_ref: (i, 0)),
        ),
        compiler_params=pltpu.CompilerParams(
            dimension_semantics=("parallel",),          # no carried state; lets v7x use both TCs
        ),
    )(seed_arr, xg, wbig, b_tiled)

    out2d = out.reshape(M_pad, N)[:M]
    return out2d.reshape(B, C, H, N)


if __name__ == "__main__":
    key = jax.random.PRNGKey(0)
    kx, kw, kb = jax.random.split(key, 3)

    # in_features = x.size(1); fc only type-checks when x.size(-1) == in_features,
    # so pick a small shape with C == W.
    B, C, H, W = 2, 32, 16, 32
    IN_F, OUT_F = C, 8

    x = jax.random.normal(kx, (B, C, H, W), dtype=jnp.float32)
    bound = 1.0 / (IN_F ** 0.5)
    weight = jax.random.uniform(kw, (OUT_F, IN_F), minval=-bound, maxval=bound,
                                dtype=jnp.float32)
    bias = jax.random.uniform(kb, (OUT_F,), minval=-bound, maxval=bound,
                              dtype=jnp.float32)

    # Eval-mode path is deterministic -> check against a pure-JAX reference.
    out_eval = fused_dropout_relu_linear_relu(x, weight, bias, seed=0, training=False)
    jax.block_until_ready(out_eval)
    ref = jnp.maximum(jnp.maximum(x, 0.0).reshape(-1, IN_F) @ weight.T + bias, 0.0)
    ref = ref.reshape(B, C, H, OUT_F)
    assert bool(jnp.allclose(out_eval, ref, atol=1e-4, rtol=1e-4))

    # Training mode (nn.Module default): dropout(0.8) -> relu -> fc -> relu.
    # TODO(synk): the dropout mask comes from an in-kernel counter-based hash,
    # not torch's RNG stream, so the exact mask differs (statistics identical).
    out = fused_dropout_relu_linear_relu(x, weight, bias, seed=0, training=True)
    jax.block_until_ready(out)

    assert out.shape == (B, C, H, OUT_F)
    assert out.dtype == jnp.float32
    assert bool(jnp.all(jnp.isfinite(out)))
    assert bool(jnp.all(out >= 0.0))      # final relu
    assert bool(jnp.any(out > 0.0))       # not everything dropped

    print("KERNEL_OK")
</pallas_src>

<mosaic_0001>
module attributes {stable_mosaic.version = 11 : i64} {
  func.func @_fused_kernel(%arg0: i32, %arg1: memref<1xi32, #tpu.memory_space<smem>>, %arg2: memref<32x512xf32, #tpu.memory_space<vmem>>, %arg3: memref<512x128xf32, #tpu.memory_space<vmem>>, %arg4: memref<1x128xf32, #tpu.memory_space<vmem>>, %arg5: memref<32x128xf32, #tpu.memory_space<vmem>>) attributes {dimension_semantics = [#tpu.dimension_semantics<parallel>], iteration_bounds = array<i64: 2>, scalar_prefetch = 1 : i64, scratch_operands = 0 : i64, tpu.core_type = #tpu.core_type<tc>, window_params = [{transform_indices = @transform_0, window_bounds = array<i64: 32, 512>}, {pipeline_mode = #tpu.pipeline_mode<synchronous>, transform_indices = @transform_1, window_bounds = array<i64: 512, 128>}, {pipeline_mode = #tpu.pipeline_mode<synchronous>, transform_indices = @transform_2, window_bounds = array<i64: 1, 128>}, {transform_indices = @transform_3, window_bounds = array<i64: 32, 128>}]} {
    %c0 = arith.constant 0 : index
    %c0_0 = arith.constant 0 : index
    %0 = vector.load %arg2[%c0, %c0_0] : memref<32x512xf32, #tpu.memory_space<vmem>>, vector<32x512xf32>
    %cst = arith.constant 0.000000e+00 : f32
    %1 = vector.broadcast %cst : f32 to vector<32x512xf32>
    %2 = arith.maximumf %0, %1 : vector<32x512xf32>
    %c0_1 = arith.constant 0 : index
    %c0_2 = arith.constant 0 : index
    %3 = vector.load %arg3[%c0_1, %c0_2] : memref<512x128xf32, #tpu.memory_space<vmem>>, vector<512x128xf32>
    %cst_3 = arith.constant dense<0.000000e+00> : vector<32x128xf32>
    %4 = tpu.matmul %2, %3, %cst_3 {dimension_numbers = #tpu.dot_dimension_numbers<[1], [0], [0], [1], [0, 0, 1, 1], [], []>} : vector<32x512xf32>, vector<512x128xf32>, vector<32x128xf32> -> vector<32x128xf32>
    %c0_4 = arith.constant 0 : index
    %c0_5 = arith.constant 0 : index
    %5 = vector.load %arg4[%c0_4, %c0_5] : memref<1x128xf32, #tpu.memory_space<vmem>>, vector<1x128xf32>
    %6 = vector.broadcast %5 : vector<1x128xf32> to vector<32x128xf32>
    %7 = arith.addf %4, %6 : vector<32x128xf32>
    %cst_6 = arith.constant 0.000000e+00 : f32
    %8 = vector.broadcast %cst_6 : f32 to vector<32x128xf32>
    %9 = arith.maximumf %7, %8 : vector<32x128xf32>
    %c0_7 = arith.constant 0 : index
    %c0_8 = arith.constant 0 : index
    %10 = vector.load %arg5[%c0_7, %c0_8] : memref<32x128xf32, #tpu.memory_space<vmem>>, vector<32x128xf32>
    tpu.vector_store %arg5[%c0_7, %c0_8], %9 {strides = array<i32>} : memref<32x128xf32, #tpu.memory_space<vmem>>, vector<32x128xf32>,
    return
  }
  func.func @transform_0(%arg0: i32, %arg1: memref<1xi32, #tpu.memory_space<smem>>) -> (i32, i32) {
    %c0_i32 = arith.constant 0 : i32
    %c0_i32_0 = arith.constant 0 : i32
    return %arg0, %c0_i32 : i32, i32
  }
  func.func @transform_1(%arg0: i32, %arg1: memref<1xi32, #tpu.memory_space<smem>>) -> (i32, i32) {
    %c0_i32 = arith.constant 0 : i32
    %c0_i32_0 = arith.constant 0 : i32
    %c0_i32_1 = arith.constant 0 : i32
    return %c0_i32, %c0_i32_0 : i32, i32
  }
  func.func @transform_2(%arg0: i32, %arg1: memref<1xi32, #tpu.memory_space<smem>>) -> (i32, i32) {
    %c0_i32 = arith.constant 0 : i32
    %c0_i32_0 = arith.constant 0 : i32
    %c0_i32_1 = arith.constant 0 : i32
    return %c0_i32, %c0_i32_0 : i32, i32
  }
  func.func @transform_3(%arg0: i32, %arg1: memref<1xi32, #tpu.memory_space<smem>>) -> (i32, i32) {
    %c0_i32 = arith.constant 0 : i32
    %c0_i32_0 = arith.constant 0 : i32
    return %arg0, %c0_i32 : i32, i32
  }
}

</mosaic_0001>

<bundles_post_ra>
// kernel: tpu_custom_call.1
= control target key start
LH: loop header
LB: loop body
LE: loop exit
PB: predicated region body
PF: predicated region fallthrough
CT: control target
= control target key end

     0   :  { %10 = vsyncpa [#allocation5], 0  ;;  %s1116_s0 = inlined_call_operand.<no memory space> [shape: s32[1], index: 0, kind: input, shape index: {}]   ;;  %s1117_s1 = inlined_call_operand.hbm [shape: f32[64,512], index: 1, kind: input, shape index: {}]   ;;  %s1118_s2 = inlined_call_operand.hbm [shape: f32[512,128], index: 2, kind: input, shape index: {}]   ;;  %s1119_s3 = inlined_call_operand.vmem [shape: f32[1,128], index: 3, kind: input, shape index: {}]   ;;  %s1120_s4 = inlined_call_operand.hbm [shape: f32[64,128], index: 4, kind: output, shape index: {}]  }
   0x1   :  { %12 = vsyncpa [#allocation5 + $0x1], 0 }
   0x2   :  { %13 = vsyncpa [#allocation8], 0 }
   0x3   :  { %14 = vsyncpa [#allocation6], 0 }
   0x4   :  { %16 = vsyncpa [#allocation6 + $0x1], 0  ;;  %s917_s15 = smov 0   ;;  %s919_s0 = smov 0  }
   0x5   :  { %s921_s16 = smov 0   ;;  %s923_s17 = smov 0  }
   0x6 LB: > { %s938_s18 = sadd.s32 4294967295, %s881_s17   ;;  %s587_s19 = sadd.s32 4294967294, %s881_s17   ;;  %s881_s17 = sphi %s923_s17, %s1142_s17   ;;  %s877_s16 = sphi %s921_s16, %s1141_s16   ;;  %s873_s0 = sphi %s919_s0, %s1140_s0   ;;  %s869_s15 = sphi %s917_s15, %s1139_s15  }
   0x7   : > { %p42_p0 = scmp.ne.s32.totalorder %s873_s0, %s869_s15  ;;  %p1121_p1 = scmp.eq.s32.totalorder %s938_s18, 0 }
   0x8   : > { %p114_p3 = scmp.eq.s32.totalorder %s587_s19, 1  ;;  %p588_p5 = scmp.ge.s32.totalorder %s881_s17, 1 }
   0x9   : > { %p947_p4 = por %p1121_p1, %p42_p0  ;;  %p121_p7 = scmp.lt.s32.totalorder %s881_s17, 3 }
   0xa   : > { %p952_p6 = por %p114_p3, %p42_p0  ;;  %s883_s23 = smov [#allocation7]  }
   0xb   : > { %s1125_s20 = scalar_select %p947_p4, 1, 0 }
   0xc   : > { %s1126_s21 = scalar_select %p952_p6, 1, 0 }
   0xd   : > { %p957_p8 = pnand %p588_p5, %p121_p7  ;;  %s133_s24 = sshll.u32 %s883_s23, 4  ;;  %s134_s24 = int_to_ptr.vmem [resolvable:$true] %s133_s24 }
   0xe   : > { %s971_s26 = sadd.s32 1, %s881_s17   ;;  %s29_s27 = sadd.s32 1, %s877_s16 }
   0xf   : > { %s1127_s22 = scalar_select %p957_p8, 1, 0 }
  0x10   : > { %p704_p9 = pneg %p957_p8  ;;  %s26_s28 = ssub.s32 %s881_s17, %s971_s26 }
  0x11   : > { %s770_s29 = scalar_lea.vmem %s134_s24, 8192  ;;  %p778_p5 = scmp.lt.s32.totalorder %s134_s24, %s134_s24 }
  0x12   : > { %p966_p11 = pnand %p704_p9, %p1121_p1  ;;  %p771_p13 = scmp.ne.s32.totalorder %s134_s24, %s770_s29 }
  0x13   : > { %p779_p7 = scmp.lt.s32.totalorder %s770_s29, %s770_s29 }
  0x14   : > { %p761_p12 = pneg %p966_p11 }
  0x15   : > { %p780_p10 = por %p779_p7, %p778_p5 }
  0x16   : > { %p773_p0 = pnand %p771_p13, %p761_p12 }
  0x18   : > { %p774_p3 = pneg %p773_p0 }
  0x1a   : > { %p781_p2 = pnand %p780_p10, %p774_p3 }
  0x1c   : > { %784 = shalt.err (!%p781_p2)
}
  0x1d   : > { %s884_s30 = smov 128   ;;  %s885_s5 = smov 8  }
  0x1e   : > { %707 = dma.hbm_to_vmem [thread:$0]  (!%p966_p11), %s1118_s2, 8192, %s134_s24, [#allocation8], %s884_s30, %s884_s30, %s885_s5  }
  0x1f   : > { %p27_p9 = scmp.eq.s32.totalorder %s26_s28, 0  ;;  %p36_p12 = scmp.ne.s32.totalorder %s877_s16, %s873_s0 }
  0x20   : > { %p37_p10 = scmp.eq.s32.totalorder %s881_s17, 0  ;;  %p717_p2 = scmp.lt.s32.totalorder %s881_s17, 2 }
  0x21   : > { %s988_s8 = scalar_select %p27_p9, %s877_s16, %s29_s27  }
  0x22   : > { %p38_p13 = por %p37_p10, %p36_p12  ;;  %p1129_p0 = scmp.eq.s32.totalorder %s938_s18, 1 }
  0x23   : > { %s150_s10 = sand.u32 1, %s877_s16   ;;  %s606_s11 = sshll.u32 %s881_s17, 11 }
  0x24   : > { %p992_p3 = por %p1129_p0, %p36_p12  ;;  %s591_s12 = sshll.u32 %s150_s10, 7 }
  0x25   : > { %s1001_s19 = scalar_lea.hbm %s1117_s1, %s606_s11  ;;  %s154_s23 = scalar_lea.vmem [#allocation4], %s591_s12 }
  0x26   : > { %s1130_s9 = scalar_select %p992_p3, 1, 0 }
  0x27   : > { %s162_s24 = sshll.u32 %s154_s23, 4  ;;  %p1003_p11 = pnand %p717_p2, %p38_p13  ;;  %s1007_s24 = int_to_ptr.vmem [resolvable:$true] %s162_s24 }
  0x28   : > { %s1009_s27 = scalar_lea.sflag [#allocation5], %s150_s10  ;;  %s785_s28 = scalar_lea.hbm %s1001_s19, 2048 }
  0x29   : > { %p786_p5 = scmp.ne.s32.totalorder %s1001_s19, %s785_s28  ;;  %p787_p7 = pneg %p1003_p11 }
  0x2a   : > { %s790_s5 = scalar_lea.hbm %s1117_s1, 4096  ;;  %p791_p10 = scmp.lt.s32.totalorder %s1001_s19, %s1117_s1 }
  0x2b   : > { %p788_p9 = pnand %p787_p7, %p786_p5  ;;  %p792_p2 = scmp.lt.s32.totalorder %s790_s5, %s785_s28 }
  0x2d   : > { %p789_p12 = pneg %p788_p9  ;;  %p793_p13 = por %p792_p2, %p791_p10 }
  0x2f   : > { %p794_p0 = pnand %p793_p13, %p789_p12 }
  0x31   : > { %797 = shalt.err (!%p794_p0)
}
  0x32   : > { %s798_s10 = scalar_lea.vmem %s1007_s24, 2048  ;;  %s886_s11 = smov [#allocation4]  }
  0x33   : > { %p799_p1 = scmp.ne.s32.totalorder %s1007_s24, %s798_s10  ;;  %s803_s12 = sshll.u32 %s886_s11, 4  ;;  %s804_s12 = int_to_ptr.vmem [resolvable:$false] %s803_s12 }
  0x34   : > { %s805_s13 = scalar_lea.vmem %s804_s12, 4096  ;;  %p806_p9 = scmp.lt.s32.totalorder %s1007_s24, %s804_s12 }
  0x35   : > { %p801_p6 = pnand %p799_p1, %p787_p7  ;;  %p807_p3 = scmp.lt.s32.totalorder %s805_s13, %s798_s10 }
  0x37   : > { %p802_p5 = pneg %p801_p6  ;;  %p808_p4 = por %p807_p3, %p806_p9 }
  0x39   : > { %p809_p8 = pnand %p808_p4, %p802_p5 }
  0x3b   : > { %812 = shalt.err (!%p809_p8)
}
  0x3c   : > { %s887_s14 = smov 512   ;;  %s888_s23 = smov 32  }
  0x3d   : > { %711 = dma.hbm_to_vmem [thread:$0]  (!%p1003_p11), %s1001_s19, 2048, %s1007_s24, %s1009_s27, %s887_s14, %s887_s14, %s888_s23  }
  0x3e   : > { %p1132_p1 = scmp.ne.s32.totalorder %s1127_s22, 0 }
  0x3f   : > { %s1033_s28 = sand.u32 (!%p1132_p1), 1, %s873_s0   ;;  %p1133_p4 = scmp.ne.s32.totalorder (!%p1132_p1), %s1125_s20, 0 }
  0x40   : > { %174 = sbr.rel (%p1132_p1) target bundleno = 337 (0x151), region = 32  ;;  %s596_s29 = sshll.u32 (!%p1132_p1), %s1033_s28, 7 }
  0x41   : > { %s177_s30 = scalar_lea.sflag (!%p1132_p1), [#allocation5], %s1033_s28  ;;  %s1037_s5 = scalar_lea.vmem (!%p1132_p1), [#allocation4], %s596_s29 }
  0x45   : > { %856 = dma.done.wait (%p1133_p4), %s177_s30, 2048  }
  0x46   : > { %858 = vsyncadd (%p1133_p4), %s177_s30, 4294965248  ;;  %p1134_p6 = scmp.eq.s32.totalorder %s938_s18, 0 }
  0x48   : > { %860 = dma.done.wait (%p1134_p6), [#allocation8], 8192   ;;  %p1135_p8 = pmov %p1134_p6 }
  0x49   : > { %v272_v0 = vld [vmem:[#allocation7 + $0xf8] sm:$0xff]  ;;  %v271_v4 = vld [vmem:[#allocation7 + $0xf0] sm:$0xff]  ;;  %v270_v8 = vld [vmem:[#allocation7 + $0xe8] sm:$0xff]  ;;  %s598_s19 = sshll.u32 %s1033_s28, 5  ;;  %s607_s27 = sshll.u32 %s938_s18, 9 }
  0x4a   : > { %862 = vsyncadd (%p1135_p8), [#allocation8], 4294959104  ;;  %v304_v1 = vld [vmem:[#allocation7 + $0x1f8] sm:$0xff]  ;;  %608 = vmatprep.subr.mxu0 %v272_v0  ;;  %v303_v5 = vld [vmem:[#allocation7 + $0x1f0] sm:$0xff]  ;;  %s206_s24 = scalar_lea.vmem [#allocation9], %s598_s19  ;;  %s1073_s10 = scalar_lea.hbm %s1120_s4, %s607_s27 }
  0x4b   : > { %v256_v2 = vld [vmem:[#allocation7 + $0x78] sm:$0xff]  ;;  %652 = vmatprep.subr.mxu1 %v304_v1  ;;  %v255_v6 = vld [vmem:[#allocation7 + $0x70] sm:$0xff]  ;;  %v302_v9 = vld [vmem:[#allocation7 + $0x1e8] sm:$0xff]  ;;  %s504_s25 = sshll.u32 %s206_s24, 4  ;;  %s491_s11 = scalar_lea.sflag [#allocation6], %s1033_s28  ;;  %s1068_s25 = int_to_ptr.vmem [resolvable:$true] %s504_s25 }
  0x4c   : > { %v288_v3 = vld [vmem:[#allocation7 + $0x178] sm:$0xff]  ;;  %609 = vmatpush3.msra.mxu0 %v256_v2  ;;  %v287_v7 = vld [vmem:[#allocation7 + $0x170] sm:$0xff]  ;;  %v254_v10 = vld [vmem:[#allocation7 + $0x68] sm:$0xff]  ;;  %s813_s12 = scalar_lea.vmem %s1068_s25, 512  ;;  %p1136_p11 = scmp.ne.s32.totalorder %s1130_s9, 0 }
  0x4d   : > { %653 = vmatpush3.msra.mxu1 %v288_v3  ;;  %610 = vmatprep.subr.mxu0 %v271_v4  ;;  %v286_v11 = vld [vmem:[#allocation7 + $0x168] sm:$0xff]  ;;  %v269_v12 = vld [vmem:[#allocation7 + $0xe0] sm:$0xff]  ;;  %v268_v16 = vld [vmem:[#allocation7 + $0xd8] sm:$0xff]  ;;  %p814_p3 = scmp.ne.s32.totalorder %s1068_s25, %s813_s12  ;;  %s889_s18 = smov [#allocation9]  }
  0x4e   : > { %654 = vmatprep.subr.mxu1 %v303_v5  ;;  %611 = vmatpush3.msra.mxu0 %v255_v6  ;;  %v301_v13 = vld [vmem:[#allocation7 + $0x1e0] sm:$0xff]  ;;  %v300_v17 = vld [vmem:[#allocation7 + $0x1d8] sm:$0xff]  ;;  %v267_v20 = vld [vmem:[#allocation7 + $0xd0] sm:$0xff]  ;;  %s817_s13 = sshll.u32 %s889_s18, 4  ;;  %s818_s13 = int_to_ptr.vmem [resolvable:$false] %s817_s13 }
  0x4f   : > { %655 = vmatpush3.msra.mxu1 %v287_v7  ;;  %612 = vmatprep.subr.mxu0 %v270_v8  ;;  %v253_v14 = vld [vmem:[#allocation7 + $0x60] sm:$0xff]  ;;  %v252_v18 = vld [vmem:[#allocation7 + $0x58] sm:$0xff]  ;;  %v299_v21 = vld [vmem:[#allocation7 + $0x1d0] sm:$0xff]  ;;  %p815_p7 = pnand %p814_p3, %p1136_p11  ;;  %s819_s14 = scalar_lea.vmem %s818_s13, 1024 }
  0x50   : > { %656 = vmatprep.subr.mxu1 %v302_v9  ;;  %v285_v15 = vld [vmem:[#allocation7 + $0x160] sm:$0xff]  ;;  %613 = vmatpush3.msra.mxu0 %v254_v10  ;;  %v284_v19 = vld [vmem:[#allocation7 + $0x158] sm:$0xff]  ;;  %v251_v22 = vld [vmem:[#allocation7 + $0x50] sm:$0xff]  ;;  %p820_p10 = scmp.lt.s32.totalorder %s1068_s25, %s818_s13  ;;  %p821_p2 = scmp.lt.s32.totalorder %s819_s14, %s813_s12 }
  0x51   : > { %657 = vmatpush3.msra.mxu1 %v286_v11  ;;  %614 = vmatprep.subr.mxu0 %v269_v12  ;;  %v283_v23 = vld [vmem:[#allocation7 + $0x150] sm:$0xff]  ;;  %v266_v24 = vld [vmem:[#allocation7 + $0xc8] sm:$0xff]  ;;  %v265_v28 = vld [vmem:[#allocation7 + $0xc0] sm:$0xff]  ;;  %p816_p12 = pneg %p815_p7 }
  0x52   : > { %658 = vmatprep.subr.mxu1 %v301_v13  ;;  %615 = vmatpush3.msra.mxu0 %v253_v14  ;;  %v298_v25 = vld [vmem:[#allocation7 + $0x1c8] sm:$0xff]  ;;  %v297_v29 = vld [vmem:[#allocation7 + $0x1c0] sm:$0xff]  ;;  %v264_v32 = vld [vmem:[#allocation7 + $0xb8] sm:$0xff]  ;;  %p822_p13 = por %p821_p2, %p820_p10 }
  0x53   : > { %659 = vmatpush3.msra.mxu1 %v285_v15  ;;  %616 = vmatprep.subr.mxu0 %v268_v16  ;;  %v250_v26 = vld [vmem:[#allocation7 + $0x48] sm:$0xff]  ;;  %v249_v30 = vld [vmem:[#allocation7 + $0x40] sm:$0xff]  ;;  %v296_v33 = vld [vmem:[#allocation7 + $0x1b8] sm:$0xff] }
  0x54   : > { %660 = vmatprep.subr.mxu1 %v300_v17  ;;  %617 = vmatpush3.msra.mxu0 %v252_v18  ;;  %v282_v27 = vld [vmem:[#allocation7 + $0x148] sm:$0xff]  ;;  %v281_v31 = vld [vmem:[#allocation7 + $0x140] sm:$0xff]  ;;  %v248_v34 = vld [vmem:[#allocation7 + $0x38] sm:$0xff]  ;;  %p823_p0 = pnand %p822_p13, %p816_p12 }
  0x55   : > { %661 = vmatpush3.msra.mxu1 %v284_v19  ;;  %618 = vmatprep.subr.mxu0 %v267_v20  ;;  %v280_v35 = vld [vmem:[#allocation7 + $0x138] sm:$0xff]  ;;  %v263_v36 = vld [vmem:[#allocation7 + $0xb0] sm:$0xff]  ;;  %v262_v40 = vld [vmem:[#allocation7 + $0xa8] sm:$0xff] }
  0x56   : > { %662 = vmatprep.subr.mxu1 %v299_v21  ;;  %619 = vmatpush3.msra.mxu0 %v251_v22  ;;  %v295_v37 = vld [vmem:[#allocation7 + $0x1b0] sm:$0xff]  ;;  %v294_v41 = vld [vmem:[#allocation7 + $0x1a8] sm:$0xff]  ;;  %v261_v44 = vld [vmem:[#allocation7 + $0xa0] sm:$0xff] }
  0x57   : > { %663 = vmatpush3.msra.mxu1 %v283_v23  ;;  %620 = vmatprep.subr.mxu0 %v266_v24  ;;  %v247_v38 = vld [vmem:[#allocation7 + $0x30] sm:$0xff]  ;;  %v246_v42 = vld [vmem:[#allocation7 + $0x28] sm:$0xff]  ;;  %v293_v45 = vld [vmem:[#allocation7 + $0x1a0] sm:$0xff] }
  0x58   : > { %664 = vmatprep.subr.mxu1 %v298_v25  ;;  %621 = vmatpush3.msra.mxu0 %v250_v26  ;;  %v279_v39 = vld [vmem:[#allocation7 + $0x130] sm:$0xff]  ;;  %v278_v43 = vld [vmem:[#allocation7 + $0x128] sm:$0xff]  ;;  %v245_v46 = vld [vmem:[#allocation7 + $0x20] sm:$0xff] }
  0x59   : > { %665 = vmatpush3.msra.mxu1 %v282_v27  ;;  %622 = vmatprep.subr.mxu0 %v265_v28  ;;  %v277_v47 = vld [vmem:[#allocation7 + $0x120] sm:$0xff]  ;;  %v260_v48 = vld [vmem:[#allocation7 + $0x98] sm:$0xff]  ;;  %v259_v52 = vld [vmem:[#allocation7 + $0x90] sm:$0xff] }
  0x5a   : > { %666 = vmatprep.subr.mxu1 %v297_v29  ;;  %623 = vmatpush3.msra.mxu0 %v249_v30  ;;  %v292_v49 = vld [vmem:[#allocation7 + $0x198] sm:$0xff]  ;;  %v291_v53 = vld [vmem:[#allocation7 + $0x190] sm:$0xff]  ;;  %v258_v56 = vld [vmem:[#allocation7 + $0x88] sm:$0xff] }
  0x5b   : > { %667 = vmatpush3.msra.mxu1 %v281_v31  ;;  %624 = vmatprep.subr.mxu0 %v264_v32  ;;  %v244_v50 = vld [vmem:[#allocation7 + $0x18] sm:$0xff]  ;;  %v243_v54 = vld [vmem:[#allocation7 + $0x10] sm:$0xff]  ;;  %v290_v57 = vld [vmem:[#allocation7 + $0x188] sm:$0xff] }
  0x5c   : > { %668 = vmatprep.subr.mxu1 %v296_v33  ;;  %625 = vmatpush3.msra.mxu0 %v248_v34  ;;  %v276_v51 = vld [vmem:[#allocation7 + $0x118] sm:$0xff]  ;;  %v275_v55 = vld [vmem:[#allocation7 + $0x110] sm:$0xff]  ;;  %v210_v58 = vld [vmem:[%s1037_s5 + $0x8] sm:$0xff] }
  0x5d   : > { %669 = vmatpush3.msra.mxu1 %v280_v35  ;;  %626 = vmatprep.subr.mxu0 %v263_v36  ;;  %v242_v59 = vld [vmem:[#allocation7 + $0x8] sm:$0xff]  ;;  %v212_v61 = vld [vmem:[%s1037_s5 + $0x18] sm:$0xff]  ;;  %v257_v62 = vld [vmem:[#allocation7 + $0x80] sm:$0xff]  ;;  %v226_v2 = vmax.f32 %v210_v58, 0.0 }
  0x5e   : > { %670 = vmatprep.subr.mxu1 %v295_v37  ;;  %627 = vmatpush3.msra.mxu0 %v247_v38  ;;  %v274_v60 = vld [vmem:[#allocation7 + $0x108] sm:$0xff]  ;;  %v209_v63 = vld [vmem:[%s1037_s5] sm:$0xff]  ;;  %v211_v0 = vld [vmem:[%s1037_s5 + $0x10] sm:$0xff]  ;;  %v228_v6 = vmax.f32 %v212_v61, 0.0 }
  0x5f   : > { %671 = vmatpush3.msra.mxu1 %v279_v39  ;;  %628 = vmatprep.subr.mxu0 %v262_v40  ;;  %v289_v1 = vld [vmem:[#allocation7 + $0x180] sm:$0xff]  ;;  %v214_v3 = vld [vmem:[%s1037_s5 + $0x28] sm:$0xff]  ;;  %v216_v4 = vld [vmem:[%s1037_s5 + $0x38] sm:$0xff]  ;;  %v225_v8 = vmax.f32 %v209_v63, 0.0  ;;  %v227_v9 = vmax.f32 %v211_v0, 0.0 }
  0x60   : > { %672 = vmatprep.subr.mxu1 %v294_v41  ;;  %629 = vmatpush3.msra.mxu0 %v246_v42  ;;  %v241_v5 = vld [vmem:[#allocation7] sm:$0xff]  ;;  %v230_v10 = vmax.f32 %v214_v3, 0.0  ;;  %v232_v11 = vmax.f32 %v216_v4, 0.0  ;;  %v215_v13 = vld [vmem:[%s1037_s5 + $0x30] sm:$0xff]  ;;  %v218_v14 = vld [vmem:[%s1037_s5 + $0x48] sm:$0xff] }
  0x61   : > { %673 = vmatpush3.msra.mxu1 %v278_v43  ;;  %630 = vmatprep.subr.mxu0 %v261_v44  ;;  %v273_v7 = vld [vmem:[#allocation7 + $0x100] sm:$0xff]  ;;  %v220_v15 = vld [vmem:[%s1037_s5 + $0x58] sm:$0xff]  ;;  %v231_v17 = vmax.f32 %v215_v13, 0.0  ;;  %v234_v18 = vmax.f32 %v218_v14, 0.0  ;;  %v219_v21 = vld [vmem:[%s1037_s5 + $0x50] sm:$0xff] }
  0x62   : > { %674 = vmatprep.subr.mxu1 %v293_v45  ;;  %631 = vmatpush3.msra.mxu0 %v245_v46  ;;  %v213_v12 = vld [vmem:[%s1037_s5 + $0x20] sm:$0xff]  ;;  %v236_v19 = vmax.f32 %v220_v15, 0.0  ;;  %v222_v22 = vld [vmem:[%s1037_s5 + $0x68] sm:$0xff]  ;;  %v224_v23 = vld [vmem:[%s1037_s5 + $0x78] sm:$0xff]  ;;  %v235_v25 = vmax.f32 %v219_v21, 0.0 }
  0x63   : > { %675 = vmatpush3.msra.mxu1 %v277_v47  ;;  %632 = vmatprep.subr.mxu0 %v260_v48  ;;  %v229_v16 = vmax.f32 %v213_v12, 0.0  ;;  %v217_v20 = vld [vmem:[%s1037_s5 + $0x40] sm:$0xff]  ;;  %v238_v26 = vmax.f32 %v222_v22, 0.0  ;;  %v240_v27 = vmax.f32 %v224_v23, 0.0  ;;  %v223_v29 = vld [vmem:[%s1037_s5 + $0x70] sm:$0xff] }
  0x64   : > { %676 = vmatprep.subr.mxu1 %v292_v49  ;;  %633 = vmatpush3.msra.mxu0 %v244_v50  ;;  %v233_v24 = vmax.f32 %v217_v20, 0.0  ;;  %v221_v28 = vld [vmem:[%s1037_s5 + $0x60] sm:$0xff]  ;;  %v239_v31 = vmax.f32 %v223_v29, 0.0 }
  0x65   : > { %677 = vmatpush3.msra.mxu1 %v276_v51  ;;  %634 = vmatprep.subr.mxu0 %v259_v52  ;;  %v237_v30 = vmax.f32 %v221_v28, 0.0  ;;  %v599_v34 = vld [vmem:[%s1119_s3] ss:$0 sm:$0xff] }
  0x66   : > { %678 = vmatprep.subr.mxu1 %v291_v53  ;;  %635 = vmatpush3.msra.mxu0 %v243_v54 }
  0x67   : > { %679 = vmatpush3.msra.mxu1 %v275_v55  ;;  %636 = vmatprep.subr.mxu0 %v258_v56 }
  0x68   : > { %680 = vmatprep.subr.mxu1 %v290_v57  ;;  %637 = vmatpush3.msra.mxu0 %v242_v59 }
  0x69   : > { %681 = vmatpush3.msra.mxu1 %v274_v60  ;;  %638 = vmatprep.subr.mxu0 %v257_v62 }
  0x6a   : > { %682 = vmatprep.subr.mxu1 %v289_v1  ;;  %639 = vmatpush3.msra.mxu0 %v241_v5 }
  0x6b   : > { %376 = vmatprep.mubr.f32.mxu0 %v226_v2  ;;  %683 = vmatpush3.msra.mxu1 %v273_v7 }
  0x6c   : > { %461 = vmatprep.mubr.f32.mxu1 %v228_v6  ;;  %377 = vmatmul.mubr.f32.vlgmr.msra.gmra.mxu0 %v225_v8 }
  0x6d   : > { %462 = vmatmul.mubr.f32.vlgmr.msra.gmra.mxu1 %v227_v9  ;;  %381 = vmatprep.mubr.f32.mxu0 %v230_v10 }
  0x6e   : > { %466 = vmatprep.mubr.f32.mxu1 %v232_v11 }
  0x70   : > { %382 = vmatmul.mubr.f32.gmra.mxu0 %v229_v16 }
  0x71   : > { %467 = vmatmul.mubr.f32.gmra.mxu1 %v231_v17  ;;  %386 = vmatprep.mubr.f32.mxu0 %v234_v18 }
  0x72   : > { %471 = vmatprep.mubr.f32.mxu1 %v236_v19 }
  0x74   : > { %387 = vmatmul.mubr.f32.gmra.mxu0 %v233_v24 }
  0x75   : > { %472 = vmatmul.mubr.f32.gmra.mxu1 %v235_v25  ;;  %391 = vmatprep.mubr.f32.mxu0 %v238_v26 }
  0x76   : > { %476 = vmatprep.mubr.f32.mxu1 %v240_v27 }
  0x78   : > { %392 = vmatmul.mubr.f32.gmra.mxu0 %v237_v30 }
  0x79   : > { %477 = vmatmul.mubr.f32.gmra.mxu1 %v239_v31 }
 0x12c   : > { %v640_v32 = vpop.f32.mrf.mxu0 }
 0x12d   : > { %v684_v33 = vpop.f32.mrf.mxu1 }
 0x12e   : > { %v641_v35 = vpop.f32.mrf.mxu0 }
 0x12f   : > { %v685_v36 = vpop.f32.mrf.mxu1  ;;  %v642_v37 = vadd.f32 %v641_v35, %v640_v32 }
 0x130   : > { %v643_v38 = vpop.f32.mrf.mxu0  ;;  %v686_v41 = vadd.f32 %v685_v36, %v684_v33 }
 0x131   : > { %v687_v39 = vpop.f32.mrf.mxu1  ;;  %v379_v40 = vadd.f32 %v642_v37, %v599_v34 }
 0x132   : > { %v644_v42 = vpop.f32.mrf.mxu0 }
 0x133   : > { %v688_v43 = vpop.f32.mrf.mxu1  ;;  %v464_v44 = vadd.f32 %v686_v41, %v379_v40  ;;  %v645_v45 = vadd.f32 %v644_v42, %v643_v38 }
 0x134   : > { %v646_v46 = vpop.f32.mrf.mxu0  ;;  %v689_v50 = vadd.f32 %v688_v43, %v687_v39 }
 0x135   : > { %v690_v47 = vpop.f32.mrf.mxu1  ;;  %v482_v48 = vmax.f32 %v464_v44, 0.0  ;;  %v384_v49 = vadd.f32 %v645_v45, %v599_v34 }
 0x136   : > { %v647_v51 = vpop.f32.mrf.mxu0 }
 0x137   : > { %v691_v52 = vpop.f32.mrf.mxu1  ;;  %486 = vst [vmem:[%s206_s24] sm:$0xff] %v482_v48  ;;  %v469_v53 = vadd.f32 %v689_v50, %v384_v49  ;;  %v648_v54 = vadd.f32 %v647_v51, %v646_v46 }
 0x138   : > { %v649_v55 = vpop.f32.mrf.mxu0  ;;  %v692_v59 = vadd.f32 %v691_v52, %v690_v47 }
 0x139   : > { %v693_v56 = vpop.f32.mrf.mxu1  ;;  %v483_v57 = vmax.f32 %v469_v53, 0.0  ;;  %v389_v58 = vadd.f32 %v648_v54, %v599_v34 }
 0x13a   : > { %v650_v60 = vpop.f32.mrf.mxu0 }
 0x13b   : > { %v694_v61 = vpop.f32.mrf.mxu1  ;;  %487 = vst [vmem:[%s206_s24 + $0x8] sm:$0xff] %v483_v57  ;;  %v474_v62 = vadd.f32 %v692_v59, %v389_v58  ;;  %v651_v63 = vadd.f32 %v650_v60, %v649_v55 }
 0x13c   : > { %v695_v2 = vadd.f32 %v694_v61, %v693_v56 }
 0x13d   : > { %v484_v0 = vmax.f32 %v474_v62, 0.0  ;;  %v394_v1 = vadd.f32 %v651_v63, %v599_v34 }
 0x13f   : > { %488 = vst [vmem:[%s206_s24 + $0x10] sm:$0xff] %v484_v0  ;;  %v479_v3 = vadd.f32 %v695_v2, %v394_v1 }
 0x141   : > { %v485_v4 = vmax.f32 %v479_v3, 0.0 }
 0x143   : > { %489 = vst [vmem:[%s206_s24 + $0x18] sm:$0xff] %v485_v4 }
 0x144   : > { %826 = shalt.err (!%p823_p0)
}
 0x145   : > { %s827_s23 = scalar_lea.hbm %s1073_s10, 512  ;;  %s831_s5 = scalar_lea.hbm %s1120_s4, 1024 }
 0x146   : > { %p828_p5 = scmp.ne.s32.totalorder %s1073_s10, %s827_s23  ;;  %p832_p4 = scmp.lt.s32.totalorder %s1073_s10, %s1120_s4 }
 0x147   : > { %p833_p6 = scmp.lt.s32.totalorder %s831_s5, %s827_s23 }
 0x148   : > { %p829_p9 = pnand %p828_p5, %p1136_p11 }
 0x149   : > { %p834_p8 = por %p833_p6, %p832_p4 }
 0x14a   : > { %p830_p1 = pneg %p829_p9 }
 0x14c   : > { %p835_p3 = pnand %p834_p8, %p830_p1 }
 0x14e   : > { %838 = shalt.err (!%p835_p3)
}
 0x14f   : > { %s890_s19 = smov 128   ;;  %s891_s24 = smov 8  }
 0x150   : > { %702 = dma.vmem_to_hbm [thread:$0]  (%p1136_p11), %s1068_s25, 512, %s1073_s10, %s491_s11, %s890_s19, %s890_s19, %s891_s24  }
 0x151 PF: > { %s519_s27 = sand.u32 1, %s869_s15   ;;  %p1137_p7 = scmp.ne.s32.totalorder %s1126_s21, 0 }
 0x152   : > { %p1138_p12 = scmp.ge.s32.totalorder %s881_s17, 2  ;;  %s520_s6 = scalar_lea.sflag [#allocation6], %s519_s27 }
 0x154   : > { %p713_p10 = pnand %p1138_p12, %p1137_p7 }
 0x156   : > { %p714_p2 = pneg %p713_p10 }
 0x158   : > { %864 = dma.done.wait (%p714_p2), %s520_s6, 512  }
 0x159   : > { %866 = vsyncadd (%p714_p2), %s520_s6, 4294966784  ;;  %p19_p13 = scmp.ge.s32.totalorder %s971_s26, 4   ;;  %s1139_s15 = smov %s873_s0 }
 0x15a   : > { %s1140_s0 = smov %s877_s16  ;;  %s1141_s16 = smov %s988_s8 }
 0x15b   : > { %s1142_s17 = smov %s971_s26  ;;  %21 = sbr.rel (!%p19_p13) target bundleno = 6 (0x6), region = 81 }
 0x160   :  { %525 = vsyncpa [#allocation5], 1 }
 0x161   :  { %527 = vsyncpa [#allocation5 + $0x1], 1 }
 0x162   :  { %528 = vsyncpa [#allocation8], 1 }
 0x163   :  { %529 = vsyncpa [#allocation6], 1 }
 0x164   :  { %531 = vsyncpa [#allocation6 + $0x1], 1 }

</bundles_post_ra>
